<compile_context>
chip_gen: v5e
topology: v5e:2x2
jax: 0.10.0
libtpu: 0.0.40
codegen_flags: <defaults>
</compile_context>

<pallas_src>
from functools import partial

import jax
import jax.numpy as jnp
from jax.experimental import pallas as pl
from jax.experimental.pallas import tpu as pltpu

LRELU_SLOPE = 0.1
KERNEL_SIZE = 3
DILATIONS = (1, 3)


def get_padding(kernel_size, dilation=1):
    return int((kernel_size * dilation - dilation) / 2)


_D1, _D2 = DILATIONS
_PAD1 = get_padding(KERNEL_SIZE, _D1)      # 1
_PAD2 = get_padding(KERNEL_SIZE, _D2)      # 3
_HALO = _PAD1 + _PAD2                      # 4 rows actually needed on each side
_HALO_PAD = 8                              # halo rounded up to a sublane multiple
_TILE_Q = 2 * _HALO_PAD                    # tile-length quantum (16)
assert _HALO_PAD >= _HALO


def _round_up(n, m):
    return ((n + m - 1) // m) * m


# ---------------------------------------------------------------------------
# In-kernel helpers
# ---------------------------------------------------------------------------
def _shifted(a, off, length):
    """a[:, (j + off) % length, :] via an XLU sublane rotate (no ld/st relayout)."""
    if off == 0:
        return a
    return pltpu.roll(a, shift=(-off) % length, axis=1)


def _dilated_conv3(a, w_ref, b_ref, dilation, row0, nrows, compute_dtype, stack_taps):
    """bias + 3-tap dilated conv of `a` (B, L, C) f32 along axis 1, evaluated on window
    rows [row0, row0 + nrows).  row0 / nrows are sublane multiples, so every slice is
    layout-aligned; the tap shifts go through pltpu.roll (XLU slot, idle here).
    Weights are pre-stacked as (3*C, C) with rows [k*C:(k+1)*C] = tap k."""
    B, L, C = a.shape
    taps = []
    for k in range(KERNEL_SIZE):
        t = _shifted(a, k * dilation - dilation, L)   # t[:, j, :] = a[:, j + k*d - d, :]
        taps.append(t[:, row0:row0 + nrows, :].astype(compute_dtype))
    if stack_taps:
        # One MXU matmul with a 3C-deep contraction (fills the 256-deep v6e/v7x MXU
        # for C <= 256); the lane-axis concat is cheap tile placement.
        lhs = jnp.concatenate(taps, axis=-1).reshape(B * nrows, KERNEL_SIZE * C)
        acc = jnp.dot(lhs, w_ref[...], preferred_element_type=jnp.float32)
    else:
        w = w_ref[...]
        acc = jnp.dot(taps[0].reshape(B * nrows, C), w[:C],
                      preferred_element_type=jnp.float32)
        for k in range(1, KERNEL_SIZE):
            acc = acc + jnp.dot(taps[k].reshape(B * nrows, C), w[k * C:(k + 1) * C],
                                preferred_element_type=jnp.float32)
    return (acc + b_ref[...]).reshape(B, nrows, C)


# ---------------------------------------------------------------------------
# Fused kernel: one T-tile of
#   y   = x + b1 + conv_d1(leaky_relu(x))
#   out = y + b2 + conv_d3(leaky_relu(y))
# ---------------------------------------------------------------------------
def _resblock2_kernel(main_ref, tail_ref, w1_ref, b1_ref, w2_ref, b2_ref, o_ref, *,
                      tt, seq_len, compute_dtype, stack_taps):
    i = pl.program_id(0)
    B, _, C = main_ref.shape
    L = tt + 2 * _HALO_PAD

    # Window = global positions [i*tt - 8, i*tt + tt + 8); bf16 in HBM, f32 in VMEM for
    # the element-wise / roll work (bf16 is used only for the MXU operands).
    win = jnp.concatenate([main_ref[...], tail_ref[...]], axis=1).astype(jnp.float32)

    # ---- step 1 (dilation 1): y = x + b1 + conv_d1(leaky_relu(x)).
    # conv_d1's zero padding of leaky_relu(x) outside [0, T) is inherited from the
    # zero-padded input because leaky_relu(0) == 0.  Computed over the full window;
    # rows 0 and L-1 pick up rolled-around taps but are never consumed below.
    a1 = jnp.where(win >= 0, win, win * LRELU_SLOPE)
    y = win + _dilated_conv3(a1, w1_ref, b1_ref, _D1, 0, L, compute_dtype, stack_taps)

    # ---- step 2 (dilation 3): out = y + b2 + conv_d3(leaky_relu(y)).
    # conv_d3 zero-pads leaky_relu(y) outside [0, T): zero those rows by global pos.
    g = i * tt - _HALO_PAD + jax.lax.broadcasted_iota(jnp.int32, (1, L, 1), 1)
    in_seq = (g >= 0) & (g < seq_len)
    a2 = jnp.where(in_seq & (y >= 0), y, jnp.where(in_seq, y * LRELU_SLOPE, 0.0))
    out = (y[:, _HALO_PAD:_HALO_PAD + tt, :] +
           _dilated_conv3(a2, w2_ref, b2_ref, _D2, _HALO_PAD, tt,
                          compute_dtype, stack_taps))
    o_ref[...] = out.astype(o_ref.dtype)


# ---------------------------------------------------------------------------
# Tile sizing & parameter preparation (hoisted out of the per-call path)
# ---------------------------------------------------------------------------
def _choose_tile_t(B, C, T, tile_t):
    tmax = max(_TILE_Q, _round_up(T, _TILE_Q))
    if tile_t is None:
        # Budget ~24 MiB of window-sized f32 temporaries per grid step so the whole
        # per-step VMEM footprint (plus double-buffered bf16 I/O and resident weights)
        # stays well under v7x's 64 MiB; small-C stages get long tiles to amortize the
        # ~0.35 us per-grid-step overhead (big win on v5e/v6e for C <= 128).
        budget = 24 * 1024 * 1024
        per_row = B * max(C, 128) * 4 * 12
        tile_t = max(256, min(4096, budget // per_row))
    tt = max(_TILE_Q, min(_round_up(tile_t, _TILE_Q), tmax))
    # Prefer >= 2 grid steps when the sequence allows it: keeps both v7x TensorCores
    # busy and lets the Pallas pipeline overlap DMA with compute.
    if tt >= tmax and T > _TILE_Q:
        tt = max(_TILE_Q, min(tt, _round_up((T + 1) // 2, _TILE_Q)))
    return tt


def prepare_resblock2_params(params, compute_dtype=jnp.bfloat16):
    """One-time parameter prep (do this at load time, not per forward call): weight-norm
    is already folded into the effective weight; lay each conv weight out tap-major and
    contraction-stacked as (3*C, C) rows = [tap0; tap1; tap2], cast to the MXU dtype."""
    prepared = []
    for w, b in params:                              # w: (Cout, Cin, K), b: (Cout,)
        c_out, c_in, k = w.shape
        w_s = jnp.transpose(w, (2, 1, 0)).reshape(k * c_in, c_out).astype(compute_dtype)
        prepared.append((w_s, b.reshape(1, c_out).astype(jnp.float32)))
    return tuple(prepared)


# ---------------------------------------------------------------------------
# Wrapper
# ---------------------------------------------------------------------------
def resblock2_forward(x_ncw, prepared_params, *, tile_t=None, io_dtype=jnp.bfloat16,
                      stack_taps=None):
    """x_ncw: (B, C, T) like PyTorch.  prepared_params from prepare_resblock2_params.
    Returns (B, C, T) in x_ncw.dtype."""
    (w1, b1), (w2, b2) = prepared_params
    B, C, T = x_ncw.shape
    compute_dtype = w1.dtype
    if stack_taps is None:
        stack_taps = C <= 256        # 3C-deep contraction fills the 256-deep MXU

    # Channels-last with C on the lane axis; bf16 HBM I/O halves the activation DMA.
    # NOTE: in a full HiFi-GAN stack keep activations channels-last/bf16 end to end so
    # these transposes/casts disappear.  For C < 128 stages the lane axis is underfilled
    # (masked stores); packing 128/C time steps into the lane axis would fix that.
    x = jnp.transpose(x_ncw, (0, 2, 1)).astype(io_dtype)          # (B, T, C)

    tt = _choose_tile_t(B, C, T, tile_t)
    num_tiles = -(-T // tt)
    total = num_tiles * tt
    # Single pad pass: 8-row halo each side plus right-pad T up to a tile multiple.
    # Zero-padding x is equivalent to zero-padding leaky_relu(x) since lrelu(0) == 0.
    xp = jnp.pad(x, ((0, 0), (_HALO_PAD, _HALO_PAD + total - T), (0, 0)))
    tiles_per_tail = tt // _TILE_Q

    kern = partial(_resblock2_kernel, tt=tt, seq_len=T,
                   compute_dtype=compute_dtype, stack_taps=stack_taps)

    out = pl.pallas_call(
        kern,
        grid=(num_tiles,),
        out_shape=jax.ShapeDtypeStruct((B, total, C), x_ncw.dtype),
        in_specs=[
            # main tile: xp rows [i*tt, (i+1)*tt)
            pl.BlockSpec((B, tt, C), lambda i: (0, i, 0)),
            # halo tail: xp rows [(i+1)*tt, (i+1)*tt + 16)
            pl.BlockSpec((B, _TILE_Q, C), lambda i: (0, (i + 1) * tiles_per_tail, 0)),
            # weights / biases: constant index maps -> DMA'd once, resident across grid
            pl.BlockSpec((KERNEL_SIZE * C, C), lambda i: (0, 0)),
            pl.BlockSpec((1, C), lambda i: (0, 0)),
            pl.BlockSpec((KERNEL_SIZE * C, C), lambda i: (0, 0)),
            pl.BlockSpec((1, C), lambda i: (0, 0)),
        ],
        out_specs=pl.BlockSpec((B, tt, C), lambda i: (0, i, 0)),
        compiler_params=pltpu.CompilerParams(
            dimension_semantics=("parallel",),        # independent tiles (v7x: 2 TCs)
            vmem_limit_bytes=48 * 1024 * 1024,        # tile chooser budgets well below
        ),
    )(xp, xp, w1, b1, w2, b2)

    return jnp.transpose(out[:, :T, :], (0, 2, 1))    # -> (B, C, T)


# ---------------------------------------------------------------------------
# Parameter construction: weight_norm(Conv1d) with init_weights (normal, std=0.01).
# g is initialized to ||v||, so the effective weight equals v at init.
# ---------------------------------------------------------------------------
def init_resblock2_params(key, channels):
    params = []
    for _d in DILATIONS:
        kv, kb, key = jax.random.split(key, 3)
        v = 0.01 * jax.random.normal(
            kv, (channels, channels, KERNEL_SIZE), jnp.float32)   # (Cout, Cin, K)
        norm = jnp.sqrt(jnp.sum(v * v, axis=(1, 2), keepdims=True))
        w_eff = norm * v / norm
        fan_in = channels * KERNEL_SIZE
        bound = 1.0 / jnp.sqrt(fan_in)
        b = jax.random.uniform(kb, (channels,), jnp.float32, -bound, bound)
        params.append((w_eff, b))
    return params


# ---------------------------------------------------------------------------
# Pure-JAX reference (for verification)
# ---------------------------------------------------------------------------
def resblock2_reference(x_ncw, params):
    x = x_ncw
    for (w_eff, b), d in zip(params, DILATIONS):
        xt = jnp.where(x >= 0, x, x * LRELU_SLOPE)
        pad = get_padding(KERNEL_SIZE, d)
        y = jax.lax.conv_general_dilated(
            xt, w_eff, window_strides=(1,), padding=[(pad, pad)],
            rhs_dilation=(d,), dimension_numbers=("NCH", "OIH", "NCH"),
        ) + b[None, :, None]
        x = y + x
    return x


if __name__ == "__main__":
    key = jax.random.PRNGKey(0)
    kx, kp = jax.random.split(key)

    # (B, C, T, tile_t, stack_taps): single tile; multi-tile auto with T not a tile
    # multiple; explicit small tiles (3 tiles, lane-width C); unstacked-tap code path.
    configs = [
        (2, 8, 16, None, None),
        (2, 8, 50, None, None),
        (1, 128, 48, 16, None),
        (1, 128, 48, None, False),
    ]
    for B, C, T, tile_t, stack in configs:
        kx, kxi = jax.random.split(kx)
        kp, kpi = jax.random.split(kp)
        x = jax.random.normal(kxi, (B, C, T), jnp.float32)
        params = init_resblock2_params(kpi, C)
        prepared = prepare_resblock2_params(params)      # once, at "load time"

        out = jax.block_until_ready(
            resblock2_forward(x, prepared, tile_t=tile_t, stack_taps=stack))
        ref = resblock2_reference(x, params)

        assert out.shape == (B, C, T)
        # tolerance reflects bf16 HBM I/O + bf16 MXU operands (f32 accumulation)
        err = jnp.max(jnp.abs(out - ref))
        assert jnp.allclose(out, ref, rtol=2e-2, atol=2e-2), \
            f"mismatch vs reference for shape {(B, C, T)}: max abs err {err}"

    print("KERNEL_OK")
</pallas_src>

<mosaic_0001>
module attributes {stable_mosaic.version = 11 : i64} {
  func.func @_resblock2_kernel(%arg0: i32, %arg1: memref<2x16x8xbf16, #tpu.memory_space<vmem>>, %arg2: memref<2x16x8xbf16, #tpu.memory_space<vmem>>, %arg3: memref<24x8xbf16, #tpu.memory_space<vmem>>, %arg4: memref<1x8xf32, #tpu.memory_space<vmem>>, %arg5: memref<24x8xbf16, #tpu.memory_space<vmem>>, %arg6: memref<1x8xf32, #tpu.memory_space<vmem>>, %arg7: memref<2x16x8xf32, #tpu.memory_space<vmem>>) attributes {dimension_semantics = [#tpu.dimension_semantics<parallel>], iteration_bounds = array<i64: 1>, scalar_prefetch = 0 : i64, scratch_operands = 0 : i64, tpu.core_type = #tpu.core_type<tc>, window_params = [{transform_indices = @transform_0, window_bounds = array<i64: 2, 16, 8>}, {transform_indices = @transform_1, window_bounds = array<i64: 2, 16, 8>}, {pipeline_mode = #tpu.pipeline_mode<synchronous>, transform_indices = @transform_2, window_bounds = array<i64: 24, 8>}, {pipeline_mode = #tpu.pipeline_mode<synchronous>, transform_indices = @transform_3, window_bounds = array<i64: 1, 8>}, {pipeline_mode = #tpu.pipeline_mode<synchronous>, transform_indices = @transform_4, window_bounds = array<i64: 24, 8>}, {pipeline_mode = #tpu.pipeline_mode<synchronous>, transform_indices = @transform_5, window_bounds = array<i64: 1, 8>}, {transform_indices = @transform_6, window_bounds = array<i64: 2, 16, 8>}]} {
    %c0 = arith.constant 0 : index
    %c0_0 = arith.constant 0 : index
    %c0_1 = arith.constant 0 : index
    %0 = vector.load %arg1[%c0, %c0_0, %c0_1] : memref<2x16x8xbf16, #tpu.memory_space<vmem>>, vector<2x16x8xbf16>
    %c0_2 = arith.constant 0 : index
    %c0_3 = arith.constant 0 : index
    %c0_4 = arith.constant 0 : index
    %1 = vector.load %arg2[%c0_2, %c0_3, %c0_4] : memref<2x16x8xbf16, #tpu.memory_space<vmem>>, vector<2x16x8xbf16>
    %2 = tpu.concatenate %0, %1 in 1 : vector<2x16x8xbf16>, vector<2x16x8xbf16> -> vector<2x32x8xbf16>
    %3 = arith.extf %2 : vector<2x32x8xbf16> to vector<2x32x8xf32>
    %cst = arith.constant 0.000000e+00 : f32
    %4 = vector.broadcast %cst : f32 to vector<2x32x8xf32>
    %5 = arith.cmpf oge, %3, %4 : vector<2x32x8xf32>
    %cst_5 = arith.constant 1.000000e-01 : f32
    %6 = vector.broadcast %cst_5 : f32 to vector<2x32x8xf32>
    %7 = arith.mulf %3, %6 : vector<2x32x8xf32>
    %8 = arith.select %5, %3, %7 : vector<2x32x8xi1>, vector<2x32x8xf32>
    %c1_i32 = arith.constant 1 : i32
    %9 = tpu.dynamic_rotate %8 by %c1_i32 dim 1 : vector<2x32x8xf32>, i32 -> vector<2x32x8xf32>
    %10 = arith.truncf %9 : vector<2x32x8xf32> to vector<2x32x8xbf16>
    %11 = arith.truncf %8 : vector<2x32x8xf32> to vector<2x32x8xbf16>
    %c31_i32 = arith.constant 31 : i32
    %12 = tpu.dynamic_rotate %8 by %c31_i32 dim 1 : vector<2x32x8xf32>, i32 -> vector<2x32x8xf32>
    %13 = arith.truncf %12 : vector<2x32x8xf32> to vector<2x32x8xbf16>
    %14 = tpu.concatenate %10, %11, %13 in 2 : vector<2x32x8xbf16>, vector<2x32x8xbf16>, vector<2x32x8xbf16> -> vector<2x32x24xbf16>
    %15 = vector.shape_cast %14 : vector<2x32x24xbf16> to vector<64x24xbf16>
    %c0_6 = arith.constant 0 : index
    %c0_7 = arith.constant 0 : index
    %16 = vector.load %arg3[%c0_6, %c0_7] : memref<24x8xbf16, #tpu.memory_space<vmem>>, vector<24x8xbf16>
    %cst_8 = arith.constant dense<0.000000e+00> : vector<64x8xf32>
    %17 = tpu.matmul %15, %16, %cst_8 {dimension_numbers = #tpu.dot_dimension_numbers<[1], [0], [0], [1], [0, 0, 1, 1], [], []>} : vector<64x24xbf16>, vector<24x8xbf16>, vector<64x8xf32> -> vector<64x8xf32>
    %c0_9 = arith.constant 0 : index
    %c0_10 = arith.constant 0 : index
    %18 = vector.load %arg4[%c0_9, %c0_10] : memref<1x8xf32, #tpu.memory_space<vmem>>, vector<1x8xf32>
    %19 = vector.broadcast %18 : vector<1x8xf32> to vector<64x8xf32>
    %20 = arith.addf %17, %19 : vector<64x8xf32>
    %21 = vector.shape_cast %20 : vector<64x8xf32> to vector<2x32x8xf32>
    %22 = arith.addf %3, %21 : vector<2x32x8xf32>
    %c16_i32 = arith.constant 16 : i32
    %23 = arith.muli %arg0, %c16_i32 : i32
    %c8_i32 = arith.constant 8 : i32
    %24 = arith.subi %23, %c8_i32 : i32
    %25 = tpu.iota {dimensions = array<i32: 1>} : vector<1x32x1xi32>
    %26 = vector.broadcast %24 : i32 to vector<1x32x1xi32>
    %27 = arith.addi %26, %25 : vector<1x32x1xi32>
    %c0_i32 = arith.constant 0 : i32
    %28 = vector.broadcast %c0_i32 : i32 to vector<1x32x1xi32>
    %29 = arith.cmpi sge, %27, %28 : vector<1x32x1xi32>
    %c16_i32_11 = arith.constant 16 : i32
    %30 = vector.broadcast %c16_i32_11 : i32 to vector<1x32x1xi32>
    %31 = arith.cmpi slt, %27, %30 : vector<1x32x1xi32>
    %32 = arith.andi %29, %31 : vector<1x32x1xi1>
    %cst_12 = arith.constant 0.000000e+00 : f32
    %33 = vector.broadcast %cst_12 : f32 to vector<2x32x8xf32>
    %34 = arith.cmpf oge, %22, %33 : vector<2x32x8xf32>
    %35 = vector.broadcast %32 : vector<1x32x1xi1> to vector<2x32x8xi1>
    %36 = arith.andi %35, %34 : vector<2x32x8xi1>
    %cst_13 = arith.constant 1.000000e-01 : f32
    %37 = vector.broadcast %cst_13 : f32 to vector<2x32x8xf32>
    %38 = arith.mulf %22, %37 : vector<2x32x8xf32>
    %cst_14 = arith.constant 0.000000e+00 : f32
    %39 = vector.shape_cast %32 : vector<1x32x1xi1> to vector<1x32x1xi1>
    %40 = vector.broadcast %39 : vector<1x32x1xi1> to vector<2x32x8xi1>
    %41 = vector.broadcast %cst_14 : f32 to vector<2x32x8xf32>
    %42 = arith.select %40, %38, %41 : vector<2x32x8xi1>, vector<2x32x8xf32>
    %43 = arith.select %36, %22, %42 : vector<2x32x8xi1>, vector<2x32x8xf32>
    %44 = vector.extract_strided_slice %22 {offsets = [0, 8, 0], sizes = [2, 16, 8], strides = [1, 1, 1]} : vector<2x32x8xf32> to vector<2x16x8xf32>
    %c3_i32 = arith.constant 3 : i32
    %45 = tpu.dynamic_rotate %43 by %c3_i32 dim 1 : vector<2x32x8xf32>, i32 -> vector<2x32x8xf32>
    %46 = vector.extract_strided_slice %45 {offsets = [0, 8, 0], sizes = [2, 16, 8], strides = [1, 1, 1]} : vector<2x32x8xf32> to vector<2x16x8xf32>
    %47 = arith.truncf %46 : vector<2x16x8xf32> to vector<2x16x8xbf16>
    %48 = vector.extract_strided_slice %43 {offsets = [0, 8, 0], sizes = [2, 16, 8], strides = [1, 1, 1]} : vector<2x32x8xf32> to vector<2x16x8xf32>
    %49 = arith.truncf %48 : vector<2x16x8xf32> to vector<2x16x8xbf16>
    %c29_i32 = arith.constant 29 : i32
    %50 = tpu.dynamic_rotate %43 by %c29_i32 dim 1 : vector<2x32x8xf32>, i32 -> vector<2x32x8xf32>
    %51 = vector.extract_strided_slice %50 {offsets = [0, 8, 0], sizes = [2, 16, 8], strides = [1, 1, 1]} : vector<2x32x8xf32> to vector<2x16x8xf32>
    %52 = arith.truncf %51 : vector<2x16x8xf32> to vector<2x16x8xbf16>
    %53 = tpu.concatenate %47, %49, %52 in 2 : vector<2x16x8xbf16>, vector<2x16x8xbf16>, vector<2x16x8xbf16> -> vector<2x16x24xbf16>
    %54 = vector.shape_cast %53 : vector<2x16x24xbf16> to vector<32x24xbf16>
    %c0_15 = arith.constant 0 : index
    %c0_16 = arith.constant 0 : index
    %55 = vector.load %arg5[%c0_15, %c0_16] : memref<24x8xbf16, #tpu.memory_space<vmem>>, vector<24x8xbf16>
    %cst_17 = arith.constant dense<0.000000e+00> : vector<32x8xf32>
    %56 = tpu.matmul %54, %55, %cst_17 {dimension_numbers = #tpu.dot_dimension_numbers<[1], [0], [0], [1], [0, 0, 1, 1], [], []>} : vector<32x24xbf16>, vector<24x8xbf16>, vector<32x8xf32> -> vector<32x8xf32>
    %c0_18 = arith.constant 0 : index
    %c0_19 = arith.constant 0 : index
    %57 = vector.load %arg6[%c0_18, %c0_19] : memref<1x8xf32, #tpu.memory_space<vmem>>, vector<1x8xf32>
    %58 = vector.broadcast %57 : vector<1x8xf32> to vector<32x8xf32>
    %59 = arith.addf %56, %58 : vector<32x8xf32>
    %60 = vector.shape_cast %59 : vector<32x8xf32> to vector<2x16x8xf32>
    %61 = arith.addf %44, %60 : vector<2x16x8xf32>
    %c0_20 = arith.constant 0 : index
    %c0_21 = arith.constant 0 : index
    %c0_22 = arith.constant 0 : index
    %62 = vector.load %arg7[%c0_20, %c0_21, %c0_22] : memref<2x16x8xf32, #tpu.memory_space<vmem>>, vector<2x16x8xf32>
    tpu.vector_store %arg7[%c0_20, %c0_21, %c0_22], %61 {strides = array<i32>} : memref<2x16x8xf32, #tpu.memory_space<vmem>>, vector<2x16x8xf32>,
    return
  }
  func.func @transform_0(%arg0: i32) -> (i32, i32, i32) {
    %c0_i32 = arith.constant 0 : i32
    %c0_i32_0 = arith.constant 0 : i32
    %c0_i32_1 = arith.constant 0 : i32
    return %c0_i32, %arg0, %c0_i32_0 : i32, i32, i32
  }
  func.func @transform_1(%arg0: i32) -> (i32, i32, i32) {
    %c1_i32 = arith.constant 1 : i32
    %0 = arith.addi %arg0, %c1_i32 : i32
    %c1_i32_0 = arith.constant 1 : i32
    %1 = arith.muli %0, %c1_i32_0 : i32
    %c0_i32 = arith.constant 0 : i32
    %c0_i32_1 = arith.constant 0 : i32
    %c0_i32_2 = arith.constant 0 : i32
    return %c0_i32, %1, %c0_i32_1 : i32, i32, i32
  }
  func.func @transform_2(%arg0: i32) -> (i32, i32) {
    %c0_i32 = arith.constant 0 : i32
    %c0_i32_0 = arith.constant 0 : i32
    %c0_i32_1 = arith.constant 0 : i32
    return %c0_i32, %c0_i32_0 : i32, i32
  }
  func.func @transform_3(%arg0: i32) -> (i32, i32) {
    %c0_i32 = arith.constant 0 : i32
    %c0_i32_0 = arith.constant 0 : i32
    %c0_i32_1 = arith.constant 0 : i32
    return %c0_i32, %c0_i32_0 : i32, i32
  }
  func.func @transform_4(%arg0: i32) -> (i32, i32) {
    %c0_i32 = arith.constant 0 : i32
    %c0_i32_0 = arith.constant 0 : i32
    %c0_i32_1 = arith.constant 0 : i32
    return %c0_i32, %c0_i32_0 : i32, i32
  }
  func.func @transform_5(%arg0: i32) -> (i32, i32) {
    %c0_i32 = arith.constant 0 : i32
    %c0_i32_0 = arith.constant 0 : i32
    %c0_i32_1 = arith.constant 0 : i32
    return %c0_i32, %c0_i32_0 : i32, i32
  }
  func.func @transform_6(%arg0: i32) -> (i32, i32, i32) {
    %c0_i32 = arith.constant 0 : i32
    %c0_i32_0 = arith.constant 0 : i32
    %c0_i32_1 = arith.constant 0 : i32
    return %c0_i32, %arg0, %c0_i32_0 : i32, i32, i32
  }
}

</mosaic_0001>

<bundles_post_ra>
// kernel: tpu_custom_call.1
= control target key start
LH: loop header
LB: loop body
LE: loop exit
PB: predicated region body
PF: predicated region fallthrough
CT: control target
= control target key end

     0   :  { %v212_v4 = vlaneseq  ;;  %vm387_vm10 = vcmask 1043456   ;;  %vm340_vm11 = vcmask 64512   ;;  %vm353_vm12 = vcmask 130048   ;;  %s954_s0 = inlined_call_operand.vmem [shape: bf16[2,32,8], index: 0, kind: input, shape index: {}]   ;;  %s955_s1 = inlined_call_operand.vmem [shape: bf16[2,32,8], index: 1, kind: input, shape index: {}]   ;;  %s956_s2 = inlined_call_operand.vmem [shape: bf16[24,8], index: 2, kind: input, shape index: {}]   ;;  %s957_s3 = inlined_call_operand.vmem [shape: f32[1,8], index: 3, kind: input, shape index: {}]   ;;  %s958_s4 = inlined_call_operand.vmem [shape: bf16[24,8], index: 4, kind: input, shape index: {}]   ;;  %s959_s5 = inlined_call_operand.vmem [shape: f32[1,8], index: 5, kind: input, shape index: {}]   ;;  %s960_s6 = inlined_call_operand.vmem [shape: f32[2,16,8], index: 6, kind: output, shape index: {}]  }
   0x1   :  { %v643_v0 = vld [vmem:[%s955_s1 + $0x8] sm:$0xff]   ;;  %v29_v1 = vld [vmem:[%s954_s0] sm:$0xff]   ;;  %v645_v2 = vld [vmem:[%s955_s1 + $0x18] sm:$0xff]   ;;  %s693_s1 = smov 16   ;;  %vm378_vm13 = vcmask 195584  }
   0x2   :  { %89 = vst [vmem:[#allocation3] sm:$0xff] %v643_v0   ;;  %v33_v3 = vld [vmem:[%s954_s0 + $0x10] sm:$0xff]   ;;  %v746_v11 = vshrl.u32 %v212_v4, 7  ;;  %s692_s0 = smov 8  }
   0x3   :  { %30 = vst [vmem:[#allocation2] sm:$0xff] %v29_v1  }
   0x4   :  { %93 = vst [vmem:[#allocation3 + $0x8] sm:$0xff] %v645_v2   ;;  %vm247_vm4 = vcmp.lt.s32.totalorder %v746_v11, 7  ;;  %vm214_vm9 = vcmp.lt.s32.totalorder %v746_v11, 1  ;;  %vm523_vm15 = vcmp.lt.s32.totalorder %v746_v11, 5 }
   0x5   :  { %34 = vst [vmem:[#allocation2 + $0x8] sm:$0xff] %v33_v3  }
   0x9   :  { %v679_v5 = vld [vmem:[#allocation3] sm:$0xff] }
   0xa   :  { %v677_v6 = vld [vmem:[#allocation2] sm:$0xff]  ;;  %v742_v7 = vunpack.c.l.bf16 %v679_v5  ;;  %v175_v8 = vunpack.c.h.bf16 %v679_v5 }
   0xb   :  { %v172_v9 = vunpack.c.l.bf16 %v677_v6  ;;  %v744_v10 = vunpack.c.h.bf16 %v677_v6  ;;  %v680_v12 = vld [vmem:[#allocation3 + $0x8] sm:$0xff] }
   0xc   :  { %vm182_vm0 = vcmp.ge.f32.partialorder %v742_v7, 0.0  ;;  %vm183_vm1 = vcmp.ge.f32.partialorder %v175_v8, 0.0  ;;  %v190_v13 = vmul.f32 0.1, %v742_v7  ;;  %v191_v14 = vmul.f32 0.1, %v175_v8 }
   0xd   :  { %vm180_vm2 = vcmp.ge.f32.partialorder %v172_v9, 0.0  ;;  %vm181_vm3 = vcmp.ge.f32.partialorder %v744_v10, 0.0  ;;  %v188_v15 = vmul.f32 0.1, %v172_v9  ;;  %v189_v16 = vmul.f32 0.1, %v744_v10 }
   0xe   :  { %v753_v17 = vsel %vm182_vm0, %v742_v7, %v190_v13  ;;  %v755_v18 = vsel %vm183_vm1, %v175_v8, %v191_v14  ;;  %v762_v22 = vunpack.c.l.bf16 %v680_v12  ;;  %v179_v29 = vunpack.c.h.bf16 %v680_v12  ;;  %v678_v36 = vld [vmem:[#allocation2 + $0x8] sm:$0xff] }
   0xf   :  { %v233_v19 = vpack.c.bf16 %v753_v17, %v753_v17  ;;  %v234_v20 = vpack.c.bf16 %v755_v18, %v755_v18  ;;  %v243_v21 = vrot.slane %v753_v17, 1  ;;  %v245_v23 = vrot.slane %v755_v18, 1 }
  0x10   :  { %v765_v24 = vsel %vm180_vm2, %v172_v9, %v188_v15  ;;  %v768_v25 = vsel %vm181_vm3, %v744_v10, %v189_v16  ;;  %vm186_vm5 = vcmp.ge.f32.partialorder %v762_v22, 0.0  ;;  %vm187_vm6 = vcmp.ge.f32.partialorder %v179_v29, 0.0 }
  0x11   :  { %v294_v26 = vunpack.c.l.b16 %v233_v19  ;;  %v295_v27 = vunpack.c.l.b16 %v234_v20  ;;  %v231_v28 = vpack.c.bf16 %v765_v24, %v765_v24  ;;  %v232_v30 = vpack.c.bf16 %v768_v25, %v768_v25 }
  0x12   :  { %v239_v31 = vrot.slane %v765_v24, 1  ;;  %v241_v32 = vrot.slane %v768_v25, 1  ;;  %v248_v35 = vsel %vm247_vm4, %v243_v21, %v245_v23  ;;  %v194_v47 = vmul.f32 0.1, %v762_v22 }
  0x13   :  { %v301_v33 = vpack.c.b16 %v295_v27, %v294_v26  ;;  %v292_v34 = vunpack.c.l.b16 %v231_v28  ;;  %v293_v37 = vunpack.c.l.b16 %v232_v30  ;;  %v258_v39 = vpack.c.bf16 %v248_v35, %v248_v35 }
  0x14   :  { %v254_v38 = vsel %vm247_vm4, %v245_v23, %v239_v31  ;;  %v250_v40 = vsel %vm247_vm4, %v241_v32, %v243_v21  ;;  %v252_v42 = vsel %vm247_vm4, %v239_v31, %v241_v32  ;;  %v195_v50 = vmul.f32 0.1, %v179_v29 }
  0x15   :  { %306 = vrot.lane.b32.xlu0 %v301_v33, %s692_s0  ;;  %v259_v41 = vpack.c.bf16 %v254_v38, %v254_v38  ;;  %v257_v43 = vpack.c.bf16 %v250_v40, %v250_v40  ;;  %v300_v44 = vpack.c.b16 %v293_v37, %v292_v34  ;;  %v322_v45 = vunpack.c.l.b16 %v258_v39 }
  0x16   :  { %v256_v46 = vpack.c.bf16 %v252_v42, %v252_v42  ;;  %v176_v51 = vunpack.c.l.bf16 %v678_v36  ;;  %v792_v53 = vsel %vm186_vm5, %v762_v22, %v194_v47  ;;  %v794_v54 = vunpack.c.h.bf16 %v678_v36 }
  0x17   :  { %v323_v48 = vunpack.c.l.b16 %v259_v41  ;;  %v321_v49 = vunpack.c.l.b16 %v257_v43  ;;  %304 = vrot.lane.b32.xlu1 %v300_v44, %s692_s0  ;;  %v796_v56 = vsel %vm187_vm6, %v179_v29, %v195_v50  ;;  %v237_v57 = vpack.c.bf16 %v792_v53, %v792_v53 }
  0x18   :  { %v320_v52 = vunpack.c.l.b16 %v256_v46  ;;  %v238_v58 = vpack.c.bf16 %v796_v56, %v796_v56  ;;  %v244_v59 = vrot.slane %v792_v53, 1  ;;  %v246_v61 = vrot.slane %v796_v56, 1 }
  0x19   :  { %v329_v55 = vpack.c.b16 %v323_v48, %v322_v45  ;;  %vm184_vm7 = vcmp.ge.f32.partialorder %v176_v51, 0.0  ;;  %v192_v62 = vmul.f32 0.1, %v176_v51  ;;  %v298_v63 = vunpack.c.l.b16 %v237_v57 }
  0x1a   :  { %v328_v60 = vpack.c.b16 %v321_v49, %v320_v52  ;;  %v299_v0 = vunpack.c.l.b16 %v238_v58  ;;  %vm185_vm8 = vcmp.ge.f32.partialorder %v794_v54, 0.0  ;;  %v193_v1 = vmul.f32 0.1, %v794_v54  ;;  %v681_v52 = vld [vmem:[%s956_s2] sm:$0xff] }
  0x1b   :  { %v807_v2 = vsel %vm184_vm7, %v176_v51, %v192_v62  ;;  %v249_v3 = vsel %vm247_vm4, %v244_v59, %v246_v61  ;;  %v210_v34 = vrot.slane %v755_v18, 7  ;;  %v208_v35 = vrot.slane %v753_v17, 7  ;;  %v364_v17 = vld [vmem:[%s956_s2 + $0x8] sm:$0xf] }
  0x1c   :  { %v240_v4 = vrot.slane %v807_v2, 1  ;;  %v262_v5 = vpack.c.bf16 %v249_v3, %v249_v3  ;;  %v813_v6 = vsel %vm185_vm8, %v794_v54, %v193_v1  ;;  %v235_v8 = vpack.c.bf16 %v807_v2, %v807_v2 }
  0x1d   :  { %334 = vrot.lane.b32.xlu0 %v329_v55, %s693_s1  ;;  %v236_v9 = vpack.c.bf16 %v813_v6, %v813_v6  ;;  %v242_v12 = vrot.slane %v813_v6, 1  ;;  %v303_v13 = vpack.c.b16 %v299_v0, %v298_v63  ;;  %v206_v36 = vrot.slane %v768_v25, 7 }
  0x1e   :  { %v255_v14 = vsel %vm247_vm4, %v246_v61, %v240_v4  ;;  %v326_v15 = vunpack.c.l.b16 %v262_v5  ;;  %v296_v19 = vunpack.c.l.b16 %v235_v8  ;;  %v204_v37 = vrot.slane %v765_v24, 7 }
  0x1f   :  { %332 = vrot.lane.b32.xlu1 %v328_v60, %s693_s1  ;;  %v263_v16 = vpack.c.bf16 %v255_v14, %v255_v14  ;;  %v297_v20 = vunpack.c.l.b16 %v236_v9  ;;  %v251_v21 = vsel %vm247_vm4, %v242_v12, %v244_v59  ;;  %v253_v23 = vsel %vm247_vm4, %v240_v4, %v242_v12 }
  0x20   :  { %v261_v26 = vpack.c.bf16 %v251_v21, %v251_v21  ;;  %v260_v29 = vpack.c.bf16 %v253_v23, %v253_v23  ;;  %v215_v38 = vsel %vm214_vm9, %v208_v35, %v210_v34  ;;  %v217_v39 = vsel %vm214_vm9, %v206_v36, %v208_v35 }
  0x21   :  { %v327_v27 = vunpack.c.l.b16 %v263_v16  ;;  %v302_v28 = vpack.c.b16 %v297_v20, %v296_v19  ;;  %v225_v40 = vpack.c.bf16 %v217_v39, %v217_v39  ;;  %v226_v41 = vpack.c.bf16 %v215_v38, %v215_v38 }
  0x22   :  { %v324_v31 = vunpack.c.l.b16 %v260_v29  ;;  %v325_v32 = vunpack.c.l.b16 %v261_v26  ;;  %v219_v18 = vsel %vm214_vm9, %v204_v37, %v206_v36  ;;  %v221_v24 = vsel %vm214_vm9, %v210_v34, %v204_v37 }
  0x23   :  { %v331_v30 = vpack.c.b16 %v327_v27, %v326_v15  ;;  %308 = vrot.lane.b32.xlu2 %v302_v28, %s692_s0  ;;  %v274_v42 = vunpack.c.l.b16 %v225_v40  ;;  %v275_v43 = vunpack.c.l.b16 %v226_v41  ;;  %v374_v25 = vunpack.c.l.b16 %v364_v17 }
  0x24   :  { %v330_v33 = vpack.c.b16 %v325_v32, %v324_v31  ;;  %v223_v45 = vpack.c.bf16 %v221_v24, %v221_v24  ;;  %v224_v46 = vpack.c.bf16 %v219_v18, %v219_v18  ;;  %v209_v55 = vrot.slane %v792_v53, 7 }
  0x25   :  { %310 = vrot.lane.b32.xlu0 %v303_v13, %s692_s0  ;;  %v281_v44 = vpack.c.b16 %v275_v43, %v274_v42  ;;  %v376_v47 = vpack.c.b16 %v374_v25, %v374_v25  ;;  %v211_v57 = vrot.slane %v796_v56, 7  ;;  %v207_v58 = vrot.slane %v813_v6, 7 }
  0x26   :  { %v272_v48 = vunpack.c.l.b16 %v223_v45  ;;  %v273_v49 = vunpack.c.l.b16 %v224_v46  ;;  %v205_v59 = vrot.slane %v807_v2, 7  ;;  %v694_v41 = vmov 0.0  }
  0x27   :  { %338 = vrot.lane.b32.xlu1 %v331_v30, %s693_s1  ;;  %v389_v50 = vsel %vm387_vm10, %v376_v47, 0  ;;  %v216_v62 = vsel %vm214_vm9, %v209_v55, %v211_v57  ;;  %v218_v53 = vsel %vm214_vm9, %v207_v58, %v209_v55  ;;  %v521_v42 = vrot.slane %v694_v41, 3 }
  0x28   :  { %v280_v51 = vpack.c.b16 %v273_v49, %v272_v48  ;;  %397 = vmatpush.bf16.msra.mxu0 %v389_v50  ;;  %683 = vmatpush.bf16.msra.mxu2 %v389_v50  ;;  %v220_v60 = vsel %vm214_vm9, %v205_v59, %v207_v58  ;;  %v222_v61 = vsel %vm214_vm9, %v211_v57, %v205_v59  ;;  %vm504_vm1 = vcmp.lt.s32.totalorder %v746_v11, 3 }
  0x29   :  { %684 = vmatpush.bf16.msra.mxu3 %v389_v50  ;;  %v227_v56 = vpack.c.bf16 %v222_v61, %v222_v61  ;;  %v228_v63 = vpack.c.bf16 %v220_v60, %v220_v60  ;;  %v229_v0 = vpack.c.bf16 %v218_v53, %v218_v53  ;;  %v230_v1 = vpack.c.bf16 %v216_v62, %v216_v62 }
  0x2b   :  { %336 = vrot.lane.b32.xlu2 %v330_v33, %s693_s1  ;;  %v276_v3 = vunpack.c.l.b16 %v227_v56  ;;  %v277_v4 = vunpack.c.l.b16 %v228_v63  ;;  %v278_v2 = vunpack.c.l.b16 %v229_v0  ;;  %v279_v5 = vunpack.c.l.b16 %v230_v1  ;;  %v690_v33 = vld [vmem:[%s957_s3] ss:$0 sm:$0xff] }
  0x2c   :  { %398 = vmatpush.bf16.msra.mxu0 %v681_v52  ;;  %685 = vmatpush.bf16.msra.mxu2 %v681_v52 }
  0x2d   :  { %686 = vmatpush.bf16.msra.mxu3 %v681_v52  ;;  %v282_v6 = vpack.c.b16 %v277_v4, %v276_v3  ;;  %v283_v8 = vpack.c.b16 %v279_v5, %v278_v2 }
  0x7d   :  { %v309_v20 = vpop.permute.xlu2 %308 }
  0x7e   :  { %v349_v29 = vsel %vm340_vm11, %v282_v6, %v309_v20 }
  0x85   :  { %v337_v30 = vpop.permute.xlu2 %336 }
  0x86   :  { %v359_v31 = vsel %vm353_vm12, %v349_v29, %v337_v30 }
  0x87   :  { %v307_v9 = vpop.permute.xlu0 %306 }
  0x88   :  { %v346_v13 = vsel %vm340_vm11, %v281_v44, %v307_v9  ;;  %v498_v44 = vrot.slane %v694_v41, 5 }
  0x89   :  { %v305_v12 = vpop.permute.xlu1 %304 }
  0x8a   :  { %v343_v16 = vsel %vm340_vm11, %v280_v51, %v305_v12 }
  0x8f   :  { %v335_v14 = vpop.permute.xlu0 %334 }
  0x90   :  { %v357_v15 = vsel %vm353_vm12, %v346_v13, %v335_v14 }
  0x91   :  { %668 = vmatmul.msk.bf16.vlgmr.msra.gmra.mxu2 %vm378_vm13, %v357_v15  ;;  %v333_v19 = vpop.permute.xlu1 %332 }
  0x92   :  { %v355_v21 = vsel %vm353_vm12, %v343_v16, %v333_v19 }
  0x93   :  { %667 = vmatmul.msk.bf16.vlgmr.msra.gmra.mxu0 %vm378_vm13, %v355_v21 }
  0x97   :  { %v311_v23 = vpop.permute.xlu0 %310 }
  0x98   :  { %v352_v26 = vsel %vm340_vm11, %v283_v8, %v311_v23 }
  0x99   :  { %v339_v27 = vpop.permute.xlu1 %338 }
  0x9a   :  { %v361_v28 = vsel %vm353_vm12, %v352_v26, %v339_v27 }
  0x9b   :  { %670 = vmatmul.msk.bf16.vlgmr.msra.gmra.mxu3 %vm378_vm13, %v361_v28 }
  0xa1   :  { %669 = vmatmul.msk.bf16.gmra.mxu2 %vm378_vm13, %v359_v31 }
 0x110   :  { %v400_v32 = vpop.f32.mrf.mxu0 }
 0x114   :  { %v405_v34 = vpop.f32.mrf.mxu2 }
 0x115   :  { %v406_v35 = vadd.f32 %v690_v33, %v405_v34 }
 0x117   :  { %v879_v36 = vadd.f32 %v406_v35, %v742_v7 }
 0x118   :  { %v402_v38 = vpop.f32.mrf.mxu0 }
 0x119   :  { %vm452_vm14 = vcmp.ge.f32.partialorder %v879_v36, 0.0  ;;  %v476_v37 = vmul.f32 0.1, %v879_v36  ;;  %v403_v39 = vadd.f32 %v690_v33, %v402_v38 }
 0x11b   :  { %v492_v40 = vsel %vm452_vm14, %v879_v36, %v476_v37  ;;  %v885_v43 = vadd.f32 %v403_v39, %v744_v10 }
 0x11c   :  { %v407_v17 = vpop.f32.mrf.mxu2  ;;  %v519_v18 = vrot.slane %v492_v40, 3  ;;  %v514_v24 = vpack.c.bf16 %v492_v40, %v492_v40  ;;  %v502_v10 = vrot.slane %v492_v40, 5 }
 0x11d   :  { %vm451_vm0 = vcmp.ge.f32.partialorder %v885_v43, 0.0  ;;  %v475_v7 = vmul.f32 0.1, %v885_v43 }
 0x11e   :  { %v415_v25 = vpop.f32.mrf.mxu3  ;;  %v524_v45 = vsel %vm523_vm15, %v519_v18, %v521_v42  ;;  %v547_v52 = vunpack.c.l.b16 %v514_v24 }
 0x11f   :  { %v416_v46 = vadd.f32 %v690_v33, %v415_v25  ;;  %v491_v47 = vsel %vm451_vm0, %v885_v43, %v475_v7  ;;  %v529_v55 = vpack.c.bf16 %v524_v45, %v524_v45  ;;  %v682_v25 = vld [vmem:[%s958_s4] sm:$0xff] }
 0x120   :  { %v513_v48 = vpack.c.bf16 %v491_v47, %v491_v47  ;;  %v517_v49 = vrot.slane %v491_v47, 3  ;;  %v500_v50 = vrot.slane %v491_v47, 5 }
 0x121   :  { %v895_v51 = vadd.f32 %v416_v46, %v762_v22  ;;  %v561_v22 = vunpack.c.l.b16 %v529_v55 }
 0x122   :  { %v546_v57 = vunpack.c.l.b16 %v513_v48  ;;  %v526_v58 = vsel %vm523_vm15, %v517_v49, %v519_v18  ;;  %v505_v59 = vsel %vm504_vm1, %v500_v50, %v502_v10  ;;  %v507_v60 = vsel %vm504_vm1, %v498_v44, %v500_v50  ;;  %v582_v18 = vld [vmem:[%s958_s4 + $0x8] sm:$0xf] }
 0x123   :  { %v528_v62 = vpack.c.bf16 %v526_v58, %v526_v58  ;;  %v509_v53 = vpack.c.bf16 %v507_v60, %v507_v60  ;;  %v510_v63 = vpack.c.bf16 %v505_v59, %v505_v59  ;;  %v480_v3 = vmul.f32 0.1, %v895_v51 }
 0x124   :  { %v410_v61 = vpop.f32.mrf.mxu2  ;;  %v550_v56 = vpack.c.b16 %v547_v52, %v546_v57  ;;  %vm456_vm2 = vcmp.ge.f32.partialorder %v895_v51, 0.0  ;;  %v592_v11 = vunpack.c.l.b16 %v582_v18  ;;  %v691_v52 = vld [vmem:[%s959_s5] ss:$0 sm:$0xff] }
 0x125   :  { %v560_v0 = vunpack.c.l.b16 %v528_v62  ;;  %v536_v1 = vunpack.c.l.b16 %v509_v53  ;;  %v537_v2 = vunpack.c.l.b16 %v510_v63  ;;  %v496_v8 = vsel %vm456_vm2, %v895_v51, %v480_v3 }
 0x126   :  { %552 = vrot.lane.b32.xlu2 %v550_v56, %s692_s0  ;;  %v417_v4 = vpop.f32.mrf.mxu3  ;;  %v520_v13 = vrot.slane %v496_v8, 3  ;;  %v516_v16 = vpack.c.bf16 %v496_v8, %v496_v8  ;;  %v503_v27 = vrot.slane %v496_v8, 5  ;;  %v594_v7 = vpack.c.b16 %v592_v11, %v592_v11 }
 0x127   :  { %v564_v5 = vpack.c.b16 %v561_v22, %v560_v0  ;;  %v540_v6 = vpack.c.b16 %v537_v2, %v536_v1 }
 0x128   :  { %v525_v19 = vsel %vm523_vm15, %v520_v13, %v521_v42  ;;  %v549_v28 = vunpack.c.l.b16 %v516_v16  ;;  %v601_v24 = vsel %vm387_vm10, %v594_v7, 0 }
 0x129   :  { %566 = vrot.lane.b32.xlu0 %v564_v5, %s693_s1  ;;  %v531_v29 = vpack.c.bf16 %v525_v19, %v525_v19  ;;  %609 = vmatpush.bf16.msra.mxu1 %v601_v24 }
 0x12b   :  { %v563_v39 = vunpack.c.l.b16 %v531_v29 }
 0x12c   :  { %v412_v9 = vpop.f32.mrf.mxu2 }
 0x12d   :  { %v413_v12 = vadd.f32 %v690_v33, %v412_v9  ;;  %610 = vmatpush.bf16.msra.mxu1 %v682_v25 }
 0x12f   :  { %v425_v14 = vadd.f32 %v413_v12, %v794_v54 }
 0x131   :  { %vm455_vm3 = vcmp.ge.f32.partialorder %v425_v14, 0.0  ;;  %v479_v15 = vmul.f32 0.1, %v425_v14 }
 0x133   :  { %v495_v20 = vsel %vm455_vm3, %v425_v14, %v479_v15 }
 0x134   :  { %v501_v21 = vrot.slane %v495_v20, 5  ;;  %v515_v23 = vpack.c.bf16 %v495_v20, %v495_v20  ;;  %v518_v26 = vrot.slane %v495_v20, 3 }
 0x136   :  { %v548_v30 = vunpack.c.l.b16 %v515_v23  ;;  %v527_v31 = vsel %vm523_vm15, %v518_v26, %v520_v13  ;;  %v508_v54 = vsel %vm504_vm1, %v498_v44, %v501_v21  ;;  %v506_v32 = vsel %vm504_vm1, %v501_v21, %v503_v27 }
 0x137   :  { %v530_v33 = vpack.c.bf16 %v527_v31, %v527_v31  ;;  %v511_v34 = vpack.c.bf16 %v508_v54, %v508_v54  ;;  %v512_v35 = vpack.c.bf16 %v506_v32, %v506_v32 }
 0x138   :  { %v551_v37 = vpack.c.b16 %v549_v28, %v548_v30 }
 0x139   :  { %v562_v38 = vunpack.c.l.b16 %v530_v33  ;;  %v538_v40 = vunpack.c.l.b16 %v511_v34  ;;  %v539_v41 = vunpack.c.l.b16 %v512_v35 }
 0x13a   :  { %554 = vrot.lane.b32.xlu1 %v551_v37, %s692_s0 }
 0x13b   :  { %v565_v42 = vpack.c.b16 %v563_v39, %v562_v38  ;;  %v541_v17 = vpack.c.b16 %v539_v41, %v538_v40 }
 0x13d   :  { %568 = vrot.lane.b32.xlu2 %v565_v42, %s693_s1 }
 0x180   :  { %v553_v44 = vpop.permute.xlu2 %552 }
 0x181   :  { %v572_v45 = vsel %vm340_vm11, %v540_v6, %v553_v44 }
 0x197   :  { %v569_v48 = vpop.permute.xlu2 %568 }
 0x19b   :  { %v567_v46 = vpop.permute.xlu0 %566 }
 0x19c   :  { %v577_v47 = vsel %vm353_vm12, %v572_v45, %v567_v46 }
 0x19d   :  { %675 = vmatmul.msk.bf16.vlgmr.msra.gmra.mxu1 %vm378_vm13, %v577_v47 }
 0x1ac   :  { %v555_v10 = vpop.permute.xlu1 %554 }
 0x1ad   :  { %v575_v49 = vsel %vm340_vm11, %v541_v17, %v555_v10 }
 0x1ae   :  { %v579_v50 = vsel %vm353_vm12, %v575_v49, %v569_v48 }
 0x1af   :  { %676 = vmatmul.msk.bf16.gmra.mxu1 %vm378_vm13, %v579_v50 }
 0x21a   :  { %v612_v55 = vpop.f32.mrf.mxu1 }
 0x21b   :  { %v613_v57 = vadd.f32 %v691_v52, %v612_v55 }
 0x21d   :  { %v622_v58 = vadd.f32 %v613_v57, %v885_v43 }
 0x21f   :  { %626 = vst.msk [vmem:[%s960_s6] sm:$0xff] %vm340_vm11, %v622_v58 }
 0x222   :  { %v614_v59 = vpop.f32.mrf.mxu1 }
 0x223   :  { %v615_v60 = vadd.f32 %v691_v52, %v614_v59 }
 0x225   :  { %v623_v61 = vadd.f32 %v615_v60, %v879_v36 }
 0x227   :  { %627 = vst.msk [vmem:[%s960_s6 + $0x8] sm:$0xff] %vm340_vm11, %v623_v61 }
 0x22c   :  { %v617_v62 = vpop.f32.mrf.mxu1 }
 0x22d   :  { %v618_v53 = vadd.f32 %v691_v52, %v617_v62 }
 0x22f   :  { %v624_v56 = vadd.f32 %v618_v53, %v425_v14 }
 0x231   :  { %628 = vst.msk [vmem:[%s960_s6 + $0x10] sm:$0xff] %vm340_vm11, %v624_v56 }
 0x234   :  { %v619_v43 = vpop.f32.mrf.mxu1 }
 0x235   :  { %v620_v63 = vadd.f32 %v691_v52, %v619_v43 }
 0x237   :  { %v625_v0 = vadd.f32 %v620_v63, %v895_v51 }
 0x239   :  { %629 = vst.msk [vmem:[%s960_s6 + $0x18] sm:$0xff] %vm340_vm11, %v625_v0 }

</bundles_post_ra>
